<compile_context>
chip_gen: v7x
topology: tpu7x:2x2x1
jax: 0.10.0
libtpu: 0.0.40
codegen_flags: <defaults>
</compile_context>

<pallas_src>
import functools

import jax
import jax.numpy as jnp
from jax.experimental import pallas as pl
from jax.experimental.pallas import tpu as pltpu


def _round_up(v: int, m: int) -> int:
    return (v + m - 1) // m * m


def _vmem_budget_bytes() -> int:
    """Per-generation scoped-VMEM budget (leave headroom below physical)."""
    try:
        cap = int(pltpu.get_tpu_info().vmem_capacity_bytes)
    except Exception:
        cap = 64 * 1024 * 1024  # conservative fallback (v7x physical per TC)
    return max(min(cap - (16 << 20), 100 << 20), 16 << 20)


def _nllsq_kernel(x_ref, p_ref, t_ref, o_ref, acc_ref, *, n, tn):
    c = pl.program_id(0)       # TensorCore split (leading "parallel" axis)
    i = pl.program_id(1)       # batch tile within this core ("arbitrary")
    steps = pl.num_programs(1)

    @pl.when(i == 0)
    def _init():
        acc_ref[...] = jnp.zeros_like(acc_ref)

    # [TN, D] @ [D, K] -> [TN, K] on the MXU, f32 accumulation.
    logits = jnp.dot(x_ref[...], p_ref[...], preferred_element_type=jnp.float32)

    # sigmoid(z) = 0.5 + 0.5*tanh(z/2): single EUP op, no exp overflow.
    pred = 0.5 + 0.5 * jnp.tanh(0.5 * logits)
    err = t_ref[...].astype(jnp.float32) - pred
    sq = err * err

    # Number of valid rows in this *logical* tile (may be <=0 for the clamped
    # duplicate tile on the last core, or <tn for the ragged last tile).
    rem = n - (c * steps + i) * tn

    @pl.when(rem >= tn)
    def _full_tile():                       # common case: no mask at all
        acc_ref[...] += sq

    @pl.when(rem < tn)
    def _ragged_tile():                     # mask OOB rows; where() blocks NaNs
        row = jax.lax.broadcasted_iota(jnp.int32, (tn, 1), 0)
        acc_ref[...] += jnp.where(row < rem, sq, 0.0)

    @pl.when(i == steps - 1)
    def _finalize():
        # One XLU reduce per core; write a lane-dense (1,8,128) output block.
        o_ref[...] = jnp.broadcast_to(jnp.sum(acc_ref[...]), o_ref.shape)


def nllsq_loss(x, params, target, *, tile_n=2048,
               compute_dtype=jnp.bfloat16, num_cores=2):
    """Pallas equivalent of NLLSQ.forward(input, target)."""
    N, D = x.shape
    Dp, K = params.shape
    assert D == Dp and target.shape == (N, K)

    compute_dtype = jnp.dtype(compute_dtype)
    itemsize = compute_dtype.itemsize
    sub = max(8, 32 // itemsize)            # sublane multiple: 8 f32 / 16 bf16

    # x / params in the compute dtype; target + accumulation stay f32.
    x_c = x if x.dtype == compute_dtype else x.astype(compute_dtype)
    p_c = params if params.dtype == compute_dtype else params.astype(compute_dtype)

    # Batch tile: as large as the VMEM budget allows (fewer grid steps => less
    # per-step overhead), sublane aligned, never larger than needed.
    budget = _vmem_budget_bytes()
    TN = max(sub, min(_round_up(tile_n, sub), _round_up(N, sub)))
    d_lanes = _round_up(D, 128)
    k_lanes = _round_up(K, 128)

    def vmem_estimate(tn):
        return (2 * tn * d_lanes * itemsize          # x tile, double buffered
                + 2 * tn * k_lanes * 4               # target tile, double buffered
                + 2 * _round_up(D, sub) * k_lanes * itemsize   # params buffers
                + tn * k_lanes * 4                   # accumulator scratch
                + 2 * 8 * 128 * 4)                   # output block buffers

    while TN > sub and vmem_estimate(TN) > budget:
        TN = _round_up(TN // 2, sub)

    nblk = pl.cdiv(N, TN)                    # real batch tiles
    nc = num_cores if nblk >= num_cores else 1
    spc = pl.cdiv(nblk, nc)                  # tiles per core (grid is rectangular)

    def batch_map(c, i):
        # Clamp the padded duplicate tile on the last core back in range; its
        # rows are fully masked in the kernel, so re-reading tile nblk-1 is safe.
        return (jnp.minimum(c * spc + i, nblk - 1), 0)

    kernel = functools.partial(_nllsq_kernel, n=N, tn=TN)

    partials = pl.pallas_call(
        kernel,
        out_shape=jax.ShapeDtypeStruct((nc, 8, 128), jnp.float32),
        grid_spec=pltpu.PrefetchScalarGridSpec(
            num_scalar_prefetch=0,
            grid=(nc, spc),
            in_specs=[
                pl.BlockSpec((TN, D), batch_map),           # x tile (streamed)
                pl.BlockSpec((D, K), lambda c, i: (0, 0)),  # params (resident)
                pl.BlockSpec((TN, K), batch_map),           # target tile (streamed)
            ],
            out_specs=pl.BlockSpec((1, 8, 128), lambda c, i: (c, 0, 0)),
            scratch_shapes=[pltpu.VMEM((TN, K), jnp.float32)],
        ),
        compiler_params=pltpu.CompilerParams(
            # Outer axis shards batch tiles across TensorCores (v7x megacore);
            # the inner axis feeds the running accumulator -> serial.
            dimension_semantics=("parallel", "arbitrary"),
            vmem_limit_bytes=budget,
        ),
        cost_estimate=pl.CostEstimate(
            flops=2 * N * D * K,
            transcendentals=N * K,   # one tanh per element
            bytes_accessed=(N * D + D * K) * itemsize + N * K * 4 + nc * 8 * 128 * 4,
        ),
    )(x_c, p_c, target)

    return jnp.sum(partials[:, 0, 0]) / float(N * K)


def _ref_loss(x, params, target):
    return jnp.mean((target - 1.0 / (1.0 + jnp.exp(-(x @ params)))) ** 2)


if __name__ == "__main__":
    # Shapes consistent with the module: N=8, D=32, K=8; targets in y_range [0,1].
    N, D, K = 8, 32, 8
    key = jax.random.PRNGKey(0)
    kx, kp, kt = jax.random.split(key, 3)

    x = jax.random.normal(kx, (N, D), dtype=jnp.float32)
    params = jax.random.normal(kp, (D, K), dtype=jnp.float32) * 0.1
    target = jax.random.uniform(kt, (N, K), dtype=jnp.float32)
    ref = _ref_loss(x, params, target)

    # 1) f32 compute path, tight-ish tolerance.
    loss_f32 = nllsq_loss(x, params, target, compute_dtype=jnp.float32)
    jax.block_until_ready(loss_f32)
    assert jnp.allclose(loss_f32, ref, atol=1e-3, rtol=1e-3), (loss_f32, ref)

    # 2) default bf16-input path (DMA / MXU win); looser tolerance for bf16.
    loss_bf16 = nllsq_loss(x, params, target)
    jax.block_until_ready(loss_bf16)
    assert jnp.allclose(loss_bf16, ref, atol=5e-3, rtol=5e-2), (loss_bf16, ref)

    # 3) multi-tile grid + 2-way core split + ragged last tile + clamped
    #    duplicate tile (N=300, TN=64 -> 5 real tiles over a (2, 3) grid).
    N2 = 300
    kx2, kt2 = jax.random.split(kt, 2)
    x2 = jax.random.normal(kx2, (N2, D), dtype=jnp.float32)
    t2 = jax.random.uniform(kt2, (N2, K), dtype=jnp.float32)
    loss2 = nllsq_loss(x2, params, t2, tile_n=64, compute_dtype=jnp.float32)
    jax.block_until_ready(loss2)
    ref2 = _ref_loss(x2, params, t2)
    assert jnp.allclose(loss2, ref2, atol=1e-3, rtol=1e-3), (loss2, ref2)

    print("KERNEL_OK")
</pallas_src>

<mosaic_0001>
module attributes {stable_mosaic.version = 11 : i64} {
  func.func @_nllsq_kernel(%arg0: i32, %arg1: i32, %arg2: memref<8x32xf32, #tpu.memory_space<vmem>>, %arg3: memref<32x8xf32, #tpu.memory_space<vmem>>, %arg4: memref<8x8xf32, #tpu.memory_space<vmem>>, %arg5: memref<1x8x128xf32, #tpu.memory_space<vmem>>, %arg6: memref<8x8xf32, #tpu.memory_space<vmem>>) attributes {dimension_semantics = [#tpu.dimension_semantics<parallel>, #tpu.dimension_semantics<arbitrary>], iteration_bounds = array<i64: 1, 1>, scalar_prefetch = 0 : i64, scratch_operands = 1 : i64, tpu.core_type = #tpu.core_type<tc>, window_params = [{transform_indices = @transform_0, window_bounds = array<i64: 8, 32>}, {pipeline_mode = #tpu.pipeline_mode<synchronous>, transform_indices = @transform_1, window_bounds = array<i64: 32, 8>}, {transform_indices = @transform_2, window_bounds = array<i64: 8, 8>}, {transform_indices = @transform_3, window_bounds = array<i64: 1, 8, 128>}]} {
    %c0_i32 = arith.constant 0 : i32
    %0 = arith.cmpi eq, %arg1, %c0_i32 : i32
    %1 = arith.extui %0 : i1 to i32
    %c0_i32_0 = arith.constant 0 : i32
    %2 = arith.cmpi ne, %1, %c0_i32_0 : i32
    scf.if %2 {
      %cst_16 = arith.constant 0.000000e+00 : f32
      %29 = vector.broadcast %cst_16 : f32 to vector<8x8xf32>
      %c0_17 = arith.constant 0 : index
      %c0_18 = arith.constant 0 : index
      %30 = vector.load %arg6[%c0_17, %c0_18] : memref<8x8xf32, #tpu.memory_space<vmem>>, vector<8x8xf32>
      tpu.vector_store %arg6[%c0_17, %c0_18], %29 {strides = array<i32>} : memref<8x8xf32, #tpu.memory_space<vmem>>, vector<8x8xf32>,
    } else {
    }
    %c0 = arith.constant 0 : index
    %c0_1 = arith.constant 0 : index
    %3 = vector.load %arg2[%c0, %c0_1] : memref<8x32xf32, #tpu.memory_space<vmem>>, vector<8x32xf32>
    %c0_2 = arith.constant 0 : index
    %c0_3 = arith.constant 0 : index
    %4 = vector.load %arg3[%c0_2, %c0_3] : memref<32x8xf32, #tpu.memory_space<vmem>>, vector<32x8xf32>
    %cst = arith.constant dense<0.000000e+00> : vector<8x8xf32>
    %5 = tpu.matmul %3, %4, %cst {dimension_numbers = #tpu.dot_dimension_numbers<[1], [0], [0], [1], [0, 0, 1, 1], [], []>} : vector<8x32xf32>, vector<32x8xf32>, vector<8x8xf32> -> vector<8x8xf32>
    %cst_4 = arith.constant 5.000000e-01 : f32
    %6 = vector.broadcast %cst_4 : f32 to vector<8x8xf32>
    %7 = arith.mulf %6, %5 : vector<8x8xf32>
    %8 = math.tanh %7 : vector<8x8xf32>
    %cst_5 = arith.constant 5.000000e-01 : f32
    %9 = vector.broadcast %cst_5 : f32 to vector<8x8xf32>
    %10 = arith.mulf %9, %8 : vector<8x8xf32>
    %cst_6 = arith.constant 5.000000e-01 : f32
    %11 = vector.broadcast %cst_6 : f32 to vector<8x8xf32>
    %12 = arith.addf %11, %10 : vector<8x8xf32>
    %c0_7 = arith.constant 0 : index
    %c0_8 = arith.constant 0 : index
    %13 = vector.load %arg4[%c0_7, %c0_8] : memref<8x8xf32, #tpu.memory_space<vmem>>, vector<8x8xf32>
    %14 = arith.subf %13, %12 : vector<8x8xf32>
    %15 = arith.mulf %14, %14 : vector<8x8xf32>
    %c1_i32 = arith.constant 1 : i32
    %16 = arith.muli %arg0, %c1_i32 : i32
    %17 = arith.addi %16, %arg1 : i32
    %c8_i32 = arith.constant 8 : i32
    %18 = arith.muli %17, %c8_i32 : i32
    %c8_i32_9 = arith.constant 8 : i32
    %19 = arith.subi %c8_i32_9, %18 : i32
    %c8_i32_10 = arith.constant 8 : i32
    %20 = arith.cmpi sge, %19, %c8_i32_10 : i32
    %21 = arith.extui %20 : i1 to i32
    %c0_i32_11 = arith.constant 0 : i32
    %22 = arith.cmpi ne, %21, %c0_i32_11 : i32
    scf.if %22 {
      %c0_16 = arith.constant 0 : index
      %c0_17 = arith.constant 0 : index
      %29 = vector.load %arg6[%c0_16, %c0_17] : memref<8x8xf32, #tpu.memory_space<vmem>>, vector<8x8xf32>
      %30 = arith.addf %29, %15 : vector<8x8xf32>
      %c0_18 = arith.constant 0 : index
      %c0_19 = arith.constant 0 : index
      %31 = vector.load %arg6[%c0_18, %c0_19] : memref<8x8xf32, #tpu.memory_space<vmem>>, vector<8x8xf32>
      tpu.vector_store %arg6[%c0_18, %c0_19], %30 {strides = array<i32>} : memref<8x8xf32, #tpu.memory_space<vmem>>, vector<8x8xf32>,
    } else {
    }
    %c8_i32_12 = arith.constant 8 : i32
    %23 = arith.cmpi slt, %19, %c8_i32_12 : i32
    %24 = arith.extui %23 : i1 to i32
    %c0_i32_13 = arith.constant 0 : i32
    %25 = arith.cmpi ne, %24, %c0_i32_13 : i32
    scf.if %25 {
      %29 = tpu.iota {dimensions = array<i32: 0>} : vector<8x1xi32>
      %c0_16 = arith.constant 0 : index
      %c0_17 = arith.constant 0 : index
      %30 = vector.load %arg6[%c0_16, %c0_17] : memref<8x8xf32, #tpu.memory_space<vmem>>, vector<8x8xf32>
      %31 = vector.broadcast %19 : i32 to vector<8x1xi32>
      %32 = arith.cmpi slt, %29, %31 : vector<8x1xi32>
      %cst_18 = arith.constant 0.000000e+00 : f32
      %33 = vector.shape_cast %32 : vector<8x1xi1> to vector<8x1xi1>
      %34 = vector.broadcast %33 : vector<8x1xi1> to vector<8x8xi1>
      %35 = vector.broadcast %cst_18 : f32 to vector<8x8xf32>
      %36 = arith.select %34, %15, %35 : vector<8x8xi1>, vector<8x8xf32>
      %37 = arith.addf %30, %36 : vector<8x8xf32>
      %c0_19 = arith.constant 0 : index
      %c0_20 = arith.constant 0 : index
      %38 = vector.load %arg6[%c0_19, %c0_20] : memref<8x8xf32, #tpu.memory_space<vmem>>, vector<8x8xf32>
      tpu.vector_store %arg6[%c0_19, %c0_20], %37 {strides = array<i32>} : memref<8x8xf32, #tpu.memory_space<vmem>>, vector<8x8xf32>,
    } else {
    }
    %c0_i32_14 = arith.constant 0 : i32
    %26 = arith.cmpi eq, %arg1, %c0_i32_14 : i32
    %27 = arith.extui %26 : i1 to i32
    %c0_i32_15 = arith.constant 0 : i32
    %28 = arith.cmpi ne, %27, %c0_i32_15 : i32
    scf.if %28 {
      %c0_16 = arith.constant 0 : index
      %c0_17 = arith.constant 0 : index
      %29 = vector.load %arg6[%c0_16, %c0_17] : memref<8x8xf32, #tpu.memory_space<vmem>>, vector<8x8xf32>
      %30 = vector.shape_cast %29 : vector<8x8xf32> to vector<1x8x8xf32>
      %cst_18 = arith.constant dense<0.000000e+00> : vector<1xf32>
      %31 = vector.multi_reduction <add>, %30, %cst_18 [1, 2] : vector<1x8x8xf32> to vector<1xf32>
      %32 = vector.shape_cast %31 : vector<1xf32> to vector<1x1x1xf32>
      %33 = vector.extract %32[0, 0, 0] : f32 from vector<1x1x1xf32>
      %34 = vector.broadcast %33 : f32 to vector<1x8x128xf32>
      %c0_19 = arith.constant 0 : index
      %c0_20 = arith.constant 0 : index
      %c0_21 = arith.constant 0 : index
      %35 = vector.load %arg5[%c0_19, %c0_20, %c0_21] : memref<1x8x128xf32, #tpu.memory_space<vmem>>, vector<1x8x128xf32>
      tpu.vector_store %arg5[%c0_19, %c0_20, %c0_21], %34 {strides = array<i32>} : memref<1x8x128xf32, #tpu.memory_space<vmem>>, vector<1x8x128xf32>,
    } else {
    }
    return
  }
  func.func @transform_0(%arg0: i32, %arg1: i32) -> (i32, i32) {
    %c1_i32 = arith.constant 1 : i32
    %0 = arith.muli %arg0, %c1_i32 : i32
    %1 = arith.addi %0, %arg1 : i32
    %c0_i32 = arith.constant 0 : i32
    %2 = arith.minsi %1, %c0_i32 : i32
    %c0_i32_0 = arith.constant 0 : i32
    %c0_i32_1 = arith.constant 0 : i32
    return %2, %c0_i32_0 : i32, i32
  }
  func.func @transform_1(%arg0: i32, %arg1: i32) -> (i32, i32) {
    %c0_i32 = arith.constant 0 : i32
    %c0_i32_0 = arith.constant 0 : i32
    %c0_i32_1 = arith.constant 0 : i32
    return %c0_i32, %c0_i32_0 : i32, i32
  }
  func.func @transform_2(%arg0: i32, %arg1: i32) -> (i32, i32) {
    %c1_i32 = arith.constant 1 : i32
    %0 = arith.muli %arg0, %c1_i32 : i32
    %1 = arith.addi %0, %arg1 : i32
    %c0_i32 = arith.constant 0 : i32
    %2 = arith.minsi %1, %c0_i32 : i32
    %c0_i32_0 = arith.constant 0 : i32
    %c0_i32_1 = arith.constant 0 : i32
    return %2, %c0_i32_0 : i32, i32
  }
  func.func @transform_3(%arg0: i32, %arg1: i32) -> (i32, i32, i32) {
    %c0_i32 = arith.constant 0 : i32
    %c0_i32_0 = arith.constant 0 : i32
    %c0_i32_1 = arith.constant 0 : i32
    return %arg0, %c0_i32, %c0_i32_0 : i32, i32, i32
  }
}

</mosaic_0001>

<bundles_post_ra>
// kernel: tpu_custom_call.1
= control target key start
LH: loop header
LB: loop body
LE: loop exit
PB: predicated region body
PF: predicated region fallthrough
CT: control target
= control target key end

     0   :  { %vm73_vm0 = vcmask 64512   ;;  %v285_v3 = vmov 0.0|0.0   ;;  %v286_v6 = vmov 0.0   ;;  %s342_s0 = inlined_call_operand.vmem [shape: f32[8,32], index: 0, kind: input, shape index: {}]   ;;  %s343_s1 = inlined_call_operand.vmem [shape: f32[32,8], index: 1, kind: input, shape index: {}]   ;;  %s344_s2 = inlined_call_operand.vmem [shape: f32[8,8], index: 2, kind: input, shape index: {}]   ;;  %s345_s3 = inlined_call_operand.hbm [shape: f32[1,8,128], index: 3, kind: output, shape index: {}]  }
   0x1   :  { %v76_v0 = vld [vmem:[%s343_s1] sm:$0xff]  ;;  %v77_v1 = vld [vmem:[%s343_s1 + $0x8] sm:$0xff]  ;;  %v78_v2 = vld [vmem:[%s343_s1 + $0x10] sm:$0xff]  ;;  %247 = vmatprep.subr.bf16.mxu0 %v285_v3  ;;  %74 = vst.msk [vmem:[#allocation2] sm:$0xff] %vm73_vm0, %v286_v6 }
   0x2   :  { %v248_v4 = vpack.c.bf16 %v77_v1, %v76_v0  ;;  %v79_v5 = vld [vmem:[%s343_s1 + $0x18] sm:$0xff] }
   0x3   :  { %8 = vsyncpa [#allocation4], 0  ;;  %vm287_vm1 = vmmov 0   ;;  %v251_v7 = vpack.c.bf16 %v79_v5, %v78_v2  ;;  %v75_v8 = vld [vmem:[%s342_s0] sm:$0xff]  ;;  %vm80_vm2 = vcmask 261120   ;;  %s288_s0 = smov [#allocation3]  }
   0x4   :  { %244 = vmatprep.mubr.msk.f32.mxu0 %vm287_vm1, %v286_v6  ;;  %249 = vmatpush3.bf16.msra.mxu0 %v248_v4  ;;  %v158_v14 = vld [vmem:[%s344_s2] sm:$0xff]  ;;  %s210_s2 = sshll.u32 %s288_s0, 4  ;;  %s211_s2 = int_to_ptr.vmem [resolvable:$true] %s210_s2 }
   0x5   :  { %250 = vmatprep.subr.bf16.mxu0 %v285_v3  ;;  %s261_s24 = scalar_lea.vmem %s211_s2, 128  ;;  %p266_p1 = scmp.lt.s32.totalorder %s211_s2, %s211_s2 }
   0x6   :  { %p262_p0 = scmp.ne.s32.totalorder %s211_s2, %s261_s24  ;;  %p267_p2 = scmp.lt.s32.totalorder %s261_s24, %s261_s24 }
   0x8   :  { %252 = vmatpush3.bf16.msra.mxu0 %v251_v7  ;;  %v168_v17 = vld [vmem:[#allocation2] sm:$0xff]  ;;  %p268_p3 = por %p267_p2, %p266_p1 }
   0xa   :  { %p269_p4 = pnand %p268_p3, %p262_p0 }
   0xb   :  { %245 = vmatmul.mubr.msk.f32.vlgmr.msra.gmra.mrb[0].mxu0 %vm80_vm2, %v75_v8 }
  0xde   :  { %v150_v9 = vpop.f32.mrb[0].mxu0 }
  0xdf   :  { %v154_v10 = vmul.f32 0.5, %v150_v9  ;;  %v246_v11 = vpop.f32.mrb[1].mxu0 }
  0xe1   :  { %259 = vtanh.f32 %v154_v10 }
  0xeb   :  { %v260_v12 = vpop.eup %259 }
  0xec   :  { %v156_v13 = vmul.f32 0.5, %v260_v12 }
  0xee   :  { %v157_v15 = vadd.f32 0.5, %v156_v13 }
  0xf0   :  { %v159_v16 = vsub.f32 %v158_v14, %v157_v15 }
  0xf2   :  { %v160_v18 = vmul.f32 %v159_v16, %v159_v16 }
  0xf4   :  { %v169_v19 = vadd.f32 %v168_v17, %v160_v18 }
  0xf6   :  { %171 = vst.msk [vmem:[#allocation2] sm:$0xff] %vm73_vm0, %v169_v19 }
  0xfd   :  { %v190_v20 = vld [vmem:[#allocation2] sm:$0xff] }
  0xfe   :  { %v192_v21 = vsel %vm73_vm0, %v190_v20, 0.0 }
  0xff   :  { %193 = vadd.xlane.f32.xlu0 %v192_v21 }
 0x18c   :  { %v194_v22 = vpop.xlane.xlu0 %193 }
 0x18d   :  { %v195_v23 = vrot.slane %v194_v22, 4 }
 0x18f   :  { %v196_v24 = vadd.f32 %v195_v23, %v194_v22 }
 0x191   :  { %v197_v25 = vrot.slane %v196_v24, 2 }
 0x193   :  { %v198_v26 = vadd.f32 %v197_v25, %v196_v24 }
 0x195   :  { %v199_v27 = vrot.slane %v198_v26, 1 }
 0x197   :  { %v200_v28 = vadd.f32 %v199_v27, %v198_v26 }
 0x199   :  { %253 = vpush %v200_v28 }
 0x1ca   :  { %s254_s23 = spop %253 }
 0x1cb   :  { %v202_v29 = vstv %s254_s23 }
 0x1cc   :  { %203 = vst [vmem:[#allocation3] sm:$0xff] %v202_v29 }
 0x1cd   :  { %272 = shalt.err (!%p269_p4)
}
 0x1ce   :  { %s273_s27 = scalar_lea.hbm %s345_s3, 128 }
 0x1cf   :  { %p274_p5 = scmp.ne.s32.totalorder %s345_s3, %s273_s27  ;;  %p277_p6 = scmp.lt.u32.totalorder %s273_s27, %s345_s3 }
 0x1d1   :  { %p279_p7 = pnand %p277_p6, %p274_p5 }
 0x1d3   :  { %282 = shalt.err (!%p279_p7)
}
 0x1d4   :  { %213 = dma.vmem_to_hbm [thread:$0]  %s211_s2, 128, %s345_s3, [#allocation4]  }
 0x1d5   :  { %283 = dma.done.wait [#allocation4], 128  }
 0x1d6   :  { %284 = vsyncadd [#allocation4], 4294967168 }
 0x1d7   :  { %217 = vsyncpa [#allocation4], 1 }

</bundles_post_ra>
